<compile_context>
chip_gen: v6e
topology: v6e:2x2x1
jax: 0.10.0
libtpu: 0.0.40
codegen_flags: <defaults>
</compile_context>

<pallas_src>
import functools

import jax
import jax.numpy as jnp
from jax import lax
from jax.experimental import pallas as pl

_EPS = 1e-8            # torch.cosine_similarity eps
_EPS2 = _EPS * _EPS


# --------------------------------------------------------------------------
# Fused kernel: weighted similarities (z1 & z2) -> sum -> MLP -> predict.
# --------------------------------------------------------------------------
def _fused_kernel(e11_ref, e21_ref, e12_ref, e22_ref, p_ref, o_ref, *,
                  d1, d2, in_dim, hidden, offs):
    # e11/e21: (T, E, d1) z1 embeddings of node1/node2 (row-gathered in wrapper)
    # e12/e22: (T, E, d2) z2 embeddings of node1/node2
    # p_ref:   (R, W) packed params, 8-row-aligned segments:
    #          [w_vec1(1,d1), w_vec2(1,d2), (W_i(K_i,H_i), b_i(1,H_i))..., pred_w(1,H), pred_b(1,1)]
    # o_ref:   (1, 2T) lane-dense output, rows ordered [cos_0..cos_{T-1}, dot_0..dot_{T-1}]
    w1 = p_ref[offs[0]:offs[0] + 1, :d1]                      # (1, d1)
    w2 = p_ref[offs[1]:offs[1] + 1, :d2]                      # (1, d2)

    def sim_feats(e1_ref, e2_ref, w, d):
        wb = jnp.reshape(w, (1, 1, d))                        # broadcast over (T, E, d)
        a = e1_ref[...] * wb
        b = e2_ref[...] * wb
        dot = jnp.sum(a * b, axis=-1)                         # (T, E)
        sa = jnp.sum(a * a, axis=-1)
        sb = jnp.sum(b * b, axis=-1)
        # torch cosine_similarity (per-norm eps clamp) via squared norms + one rsqrt.
        cos = dot * lax.rsqrt(jnp.maximum(sa, _EPS2) * jnp.maximum(sb, _EPS2))
        return cos, dot

    cos1, dot1 = sim_feats(e11_ref, e21_ref, w1, d1)
    cos2, dot2 = sim_feats(e12_ref, e22_ref, w2, d2)

    # sim1 + sim2 feature matrix, built in registers (no scratch round-trip).
    act = jnp.concatenate([cos1 + cos2, dot1 + dot2], axis=0)  # (2T, E)

    # MLP_layers: [Dropout(identity), Linear, ReLU] * L, weights sliced from the
    # single packed parameter buffer with static offsets.
    k, oi = in_dim, 2
    for h in hidden:
        w = p_ref[offs[oi]:offs[oi] + k, :h]                  # (k, h)
        b = p_ref[offs[oi + 1]:offs[oi + 1] + 1, :h]          # (1, h)
        act = jnp.dot(act, w, preferred_element_type=jnp.float32) + b
        act = jnp.maximum(act, 0.0)
        k, oi = h, oi + 2

    # predict_layer (H_last -> 1): contract the hidden dim so the result lands
    # directly lane-dense as (1, 2T) with no relayout.
    pw = p_ref[offs[oi]:offs[oi] + 1, :k]                     # (1, H_last)
    pb = p_ref[offs[oi + 1]:offs[oi + 1] + 1, 0:1]            # (1, 1)
    pred = lax.dot_general(pw, act, (((1,), (1,)), ((), ())),
                           preferred_element_type=jnp.float32) + pb   # (1, 2T)
    o_ref[...] = pred.astype(o_ref.dtype)


def _full_spec(shape):
    nd = len(shape)
    return pl.BlockSpec(shape, lambda i, _nd=nd: (0,) * _nd)


# --------------------------------------------------------------------------
# Parameter packing: everything into one 8-row-aligned (rows, width) buffer.
# --------------------------------------------------------------------------
def _pack_params(params):
    segs = [params["w_vec1"], params["w_vec2"]]
    for w_t, b in params["mlp"]:
        segs.append(w_t)        # (K, H)
        segs.append(b)          # (1, H)
    segs.append(params["pred_w"])   # (1, H_last)
    segs.append(params["pred_b"])   # (1, 1)

    width = max(int(s.shape[1]) for s in segs)
    offs, blocks, row = [], [], 0
    for s in segs:
        r, c = int(s.shape[0]), int(s.shape[1])
        r_pad = ((r + 7) // 8) * 8          # sublane-aligned segment starts
        blocks.append(jnp.pad(s.astype(jnp.float32),
                              ((0, r_pad - r), (0, width - c))))
        offs.append(row)
        row += r_pad
    return jnp.concatenate(blocks, axis=0), tuple(offs)


def _fused_forward_call(e11, e21, e12, e22, packed, offs, d1, d2, in_dim, hidden):
    T = e11.shape[0]
    kernel = functools.partial(_fused_kernel, d1=d1, d2=d2, in_dim=in_dim,
                               hidden=hidden, offs=offs)
    inputs = (e11, e21, e12, e22, packed)
    out = pl.pallas_call(
        kernel,
        out_shape=jax.ShapeDtypeStruct((1, 2 * T), jnp.float32),
        grid=(1,),
        in_specs=[_full_spec(a.shape) for a in inputs],
        out_specs=pl.BlockSpec((1, 2 * T), lambda i: (0, 0)),
    )(*inputs)
    # kernel rows are [cos_0..cos_{T-1}, dot_0..dot_{T-1}]; restore the reference's
    # interleaved [cos_t, dot_t] order.
    return out.reshape(2, T).T.reshape(-1)          # (2T,)


# --------------------------------------------------------------------------
# Parameter init (deterministic, mimics the PyTorch init choices).
# --------------------------------------------------------------------------
def init_params(key, d1, d2, lay_1_dim, hidden_layer):
    keys = jax.random.split(key, 3 + len(hidden_layer) + 1)
    params = {}
    # nn.init.normal_ on weight_vec1 / weight_vec2
    params["w_vec1"] = jax.random.normal(keys[0], (1, d1), jnp.float32)
    params["w_vec2"] = jax.random.normal(keys[1], (1, d2), jnp.float32)

    mlp = []
    in_dim = 2 * lay_1_dim
    for i, h in enumerate(hidden_layer):
        # xavier_uniform_ on weight, bias zero; store weight transposed (K, H).
        bound = (6.0 / (in_dim + h)) ** 0.5
        w = jax.random.uniform(keys[2 + i], (h, in_dim), jnp.float32, -bound, bound)
        mlp.append((w.T, jnp.zeros((1, h), jnp.float32)))
        in_dim = h
    params["mlp"] = mlp

    # kaiming_uniform_(a=1, nonlinearity='sigmoid') -> gain 1, bound sqrt(3/fan_in)
    fan_in = hidden_layer[-1]
    bound = (3.0 / fan_in) ** 0.5
    params["pred_w"] = jax.random.uniform(keys[-1], (1, fan_in), jnp.float32,
                                          -bound, bound)
    params["pred_b"] = jnp.zeros((1, 1), jnp.float32)
    return params


# --------------------------------------------------------------------------
# Forward pass: row-axis gather (glue) + single fused Pallas kernel.
# --------------------------------------------------------------------------
@jax.jit
def forward(params, edge_list, z1_trains, z2_trains):
    node1 = edge_list[0].astype(jnp.int32)
    node2 = edge_list[1].astype(jnp.int32)

    # Sublane(row)-axis gather -> (T, E, D); no HBM transpose, no lane-axis gather.
    e11 = jnp.take(z1_trains, node1, axis=1)
    e21 = jnp.take(z1_trains, node2, axis=1)
    e12 = jnp.take(z2_trains, node1, axis=1)
    e22 = jnp.take(z2_trains, node2, axis=1)

    d1 = int(params["w_vec1"].shape[1])
    d2 = int(params["w_vec2"].shape[1])
    hidden = tuple(int(b.shape[1]) for _, b in params["mlp"])
    in_dim = int(params["mlp"][0][0].shape[0])      # == 2 * lay_1_dim
    assert e11.shape[1] == in_dim, (
        "reference semantics require num_edges == 2*lay_1_dim (Linear contracts over E)")

    packed, offs = _pack_params(params)
    return _fused_forward_call(e11, e21, e12, e22, packed, offs,
                               d1, d2, in_dim, hidden)


# --------------------------------------------------------------------------
# Pure-JAX reference (mirrors the PyTorch forward) for a sanity check.
# --------------------------------------------------------------------------
def _reference(params, edge_list, z1_trains, z2_trains):
    node1 = edge_list[0]
    node2 = edge_list[1]

    def sim_rows(z, w):
        rows = []
        for t in range(z.shape[0]):
            a = w * z[t][node1]
            b = w * z[t][node2]
            dot = jnp.sum(a * b, axis=1)
            na = jnp.maximum(jnp.sqrt(jnp.sum(a * a, axis=1)), _EPS)
            nb = jnp.maximum(jnp.sqrt(jnp.sum(b * b, axis=1)), _EPS)
            rows += [dot / (na * nb), dot]
        return rows

    r1 = sim_rows(z1_trains, params["w_vec1"])
    r2 = sim_rows(z2_trains, params["w_vec2"])
    act = jnp.stack([a + b for a, b in zip(r1, r2)], axis=0)   # (2T, E)
    for w_t, b in params["mlp"]:
        act = jnp.maximum(
            jnp.dot(act, w_t, precision=lax.Precision.HIGHEST) + b, 0.0)
    out = jnp.dot(act, params["pred_w"].T,
                  precision=lax.Precision.HIGHEST) + params["pred_b"]
    return out.reshape(-1)


if __name__ == "__main__":
    key = jax.random.PRNGKey(0)
    k_z1, k_z2, k_edge, k_param = jax.random.split(key, 4)

    # small shapes: T emb-matrices, N nodes, D emb dim, E edges (== 2*lay_1_dim).
    T, N, D = 2, 16, 8
    lay_1_dim = 16
    E = 2 * lay_1_dim
    hidden_layer = [32, 16]

    z1_trains = jax.random.normal(k_z1, (T, N, D), jnp.float32)
    z2_trains = jax.random.normal(k_z2, (T, N, D), jnp.float32)
    edge_list = jax.random.randint(k_edge, (2, E), 0, N, jnp.int32)

    params = init_params(k_param, D, D, lay_1_dim, hidden_layer)

    pred = forward(params, edge_list, z1_trains, z2_trains)
    pred = jax.block_until_ready(pred)
    assert pred.shape == (2 * T,)

    ref = _reference(params, edge_list, z1_trains, z2_trains)
    err = float(jnp.max(jnp.abs(pred - ref)))
    scale = 1.0 + float(jnp.max(jnp.abs(ref)))
    assert err <= 2e-2 * scale, f"kernel/reference mismatch: err={err}, scale={scale}"

    print("KERNEL_OK")
</pallas_src>

<mosaic_0001>
module attributes {stable_mosaic.version = 11 : i64} {
  func.func @_fused_kernel(%arg0: i32, %arg1: memref<2x32x8xf32, #tpu.memory_space<vmem>>, %arg2: memref<2x32x8xf32, #tpu.memory_space<vmem>>, %arg3: memref<2x32x8xf32, #tpu.memory_space<vmem>>, %arg4: memref<2x32x8xf32, #tpu.memory_space<vmem>>, %arg5: memref<112x32xf32, #tpu.memory_space<vmem>>, %arg6: memref<1x4xf32, #tpu.memory_space<vmem>>) attributes {dimension_semantics = [#tpu.dimension_semantics<arbitrary>], iteration_bounds = array<i64: 1>, scalar_prefetch = 0 : i64, scratch_operands = 0 : i64, tpu.core_type = #tpu.core_type<tc>, window_params = [{pipeline_mode = #tpu.pipeline_mode<synchronous>, transform_indices = @transform_0, window_bounds = array<i64: 2, 32, 8>}, {pipeline_mode = #tpu.pipeline_mode<synchronous>, transform_indices = @transform_1, window_bounds = array<i64: 2, 32, 8>}, {pipeline_mode = #tpu.pipeline_mode<synchronous>, transform_indices = @transform_2, window_bounds = array<i64: 2, 32, 8>}, {pipeline_mode = #tpu.pipeline_mode<synchronous>, transform_indices = @transform_3, window_bounds = array<i64: 2, 32, 8>}, {pipeline_mode = #tpu.pipeline_mode<synchronous>, transform_indices = @transform_4, window_bounds = array<i64: 112, 32>}, {pipeline_mode = #tpu.pipeline_mode<synchronous>, transform_indices = @transform_5, window_bounds = array<i64: 1, 4>}]} {
    %c0 = arith.constant 0 : index
    %c0_0 = arith.constant 0 : index
    %0 = vector.load %arg5[%c0, %c0_0] : memref<112x32xf32, #tpu.memory_space<vmem>>, vector<1x8xf32>
    %c8 = arith.constant 8 : index
    %c0_1 = arith.constant 0 : index
    %1 = vector.load %arg5[%c8, %c0_1] : memref<112x32xf32, #tpu.memory_space<vmem>>, vector<1x8xf32>
    %2 = vector.shape_cast %0 : vector<1x8xf32> to vector<1x1x8xf32>
    %c0_2 = arith.constant 0 : index
    %c0_3 = arith.constant 0 : index
    %c0_4 = arith.constant 0 : index
    %3 = vector.load %arg1[%c0_2, %c0_3, %c0_4] : memref<2x32x8xf32, #tpu.memory_space<vmem>>, vector<2x32x8xf32>
    %4 = vector.broadcast %2 : vector<1x1x8xf32> to vector<2x32x8xf32>
    %5 = arith.mulf %3, %4 : vector<2x32x8xf32>
    %c0_5 = arith.constant 0 : index
    %c0_6 = arith.constant 0 : index
    %c0_7 = arith.constant 0 : index
    %6 = vector.load %arg2[%c0_5, %c0_6, %c0_7] : memref<2x32x8xf32, #tpu.memory_space<vmem>>, vector<2x32x8xf32>
    %7 = vector.broadcast %2 : vector<1x1x8xf32> to vector<2x32x8xf32>
    %8 = arith.mulf %6, %7 : vector<2x32x8xf32>
    %9 = arith.mulf %5, %8 : vector<2x32x8xf32>
    %cst = arith.constant dense<0.000000e+00> : vector<2x32xf32>
    %10 = vector.multi_reduction <add>, %9, %cst [2] : vector<2x32x8xf32> to vector<2x32xf32>
    %11 = arith.mulf %5, %5 : vector<2x32x8xf32>
    %cst_8 = arith.constant dense<0.000000e+00> : vector<2x32xf32>
    %12 = vector.multi_reduction <add>, %11, %cst_8 [2] : vector<2x32x8xf32> to vector<2x32xf32>
    %13 = arith.mulf %8, %8 : vector<2x32x8xf32>
    %cst_9 = arith.constant dense<0.000000e+00> : vector<2x32xf32>
    %14 = vector.multi_reduction <add>, %13, %cst_9 [2] : vector<2x32x8xf32> to vector<2x32xf32>
    %cst_10 = arith.constant 1.000000e-16 : f32
    %15 = vector.broadcast %cst_10 : f32 to vector<2x32xf32>
    %16 = arith.maximumf %12, %15 : vector<2x32xf32>
    %cst_11 = arith.constant 1.000000e-16 : f32
    %17 = vector.broadcast %cst_11 : f32 to vector<2x32xf32>
    %18 = arith.maximumf %14, %17 : vector<2x32xf32>
    %19 = arith.mulf %16, %18 : vector<2x32xf32>
    %20 = math.rsqrt %19 : vector<2x32xf32>
    %21 = arith.mulf %10, %20 : vector<2x32xf32>
    %22 = vector.shape_cast %1 : vector<1x8xf32> to vector<1x1x8xf32>
    %c0_12 = arith.constant 0 : index
    %c0_13 = arith.constant 0 : index
    %c0_14 = arith.constant 0 : index
    %23 = vector.load %arg3[%c0_12, %c0_13, %c0_14] : memref<2x32x8xf32, #tpu.memory_space<vmem>>, vector<2x32x8xf32>
    %24 = vector.broadcast %22 : vector<1x1x8xf32> to vector<2x32x8xf32>
    %25 = arith.mulf %23, %24 : vector<2x32x8xf32>
    %c0_15 = arith.constant 0 : index
    %c0_16 = arith.constant 0 : index
    %c0_17 = arith.constant 0 : index
    %26 = vector.load %arg4[%c0_15, %c0_16, %c0_17] : memref<2x32x8xf32, #tpu.memory_space<vmem>>, vector<2x32x8xf32>
    %27 = vector.broadcast %22 : vector<1x1x8xf32> to vector<2x32x8xf32>
    %28 = arith.mulf %26, %27 : vector<2x32x8xf32>
    %29 = arith.mulf %25, %28 : vector<2x32x8xf32>
    %cst_18 = arith.constant dense<0.000000e+00> : vector<2x32xf32>
    %30 = vector.multi_reduction <add>, %29, %cst_18 [2] : vector<2x32x8xf32> to vector<2x32xf32>
    %31 = arith.mulf %25, %25 : vector<2x32x8xf32>
    %cst_19 = arith.constant dense<0.000000e+00> : vector<2x32xf32>
    %32 = vector.multi_reduction <add>, %31, %cst_19 [2] : vector<2x32x8xf32> to vector<2x32xf32>
    %33 = arith.mulf %28, %28 : vector<2x32x8xf32>
    %cst_20 = arith.constant dense<0.000000e+00> : vector<2x32xf32>
    %34 = vector.multi_reduction <add>, %33, %cst_20 [2] : vector<2x32x8xf32> to vector<2x32xf32>
    %cst_21 = arith.constant 1.000000e-16 : f32
    %35 = vector.broadcast %cst_21 : f32 to vector<2x32xf32>
    %36 = arith.maximumf %32, %35 : vector<2x32xf32>
    %cst_22 = arith.constant 1.000000e-16 : f32
    %37 = vector.broadcast %cst_22 : f32 to vector<2x32xf32>
    %38 = arith.maximumf %34, %37 : vector<2x32xf32>
    %39 = arith.mulf %36, %38 : vector<2x32xf32>
    %40 = math.rsqrt %39 : vector<2x32xf32>
    %41 = arith.mulf %30, %40 : vector<2x32xf32>
    %42 = arith.addf %21, %41 : vector<2x32xf32>
    %43 = arith.addf %10, %30 : vector<2x32xf32>
    %44 = tpu.concatenate %42, %43 in 0 : vector<2x32xf32>, vector<2x32xf32> -> vector<4x32xf32>
    %c16 = arith.constant 16 : index
    %c0_23 = arith.constant 0 : index
    %45 = vector.load %arg5[%c16, %c0_23] : memref<112x32xf32, #tpu.memory_space<vmem>>, vector<32x32xf32>
    %c48 = arith.constant 48 : index
    %c0_24 = arith.constant 0 : index
    %46 = vector.load %arg5[%c48, %c0_24] : memref<112x32xf32, #tpu.memory_space<vmem>>, vector<1x32xf32>
    %cst_25 = arith.constant dense<0.000000e+00> : vector<4x32xf32>
    %47 = tpu.matmul %44, %45, %cst_25 {dimension_numbers = #tpu.dot_dimension_numbers<[1], [0], [0], [1], [0, 0, 1, 1], [], []>} : vector<4x32xf32>, vector<32x32xf32>, vector<4x32xf32> -> vector<4x32xf32>
    %48 = vector.broadcast %46 : vector<1x32xf32> to vector<4x32xf32>
    %49 = arith.addf %47, %48 : vector<4x32xf32>
    %cst_26 = arith.constant 0.000000e+00 : f32
    %50 = vector.broadcast %cst_26 : f32 to vector<4x32xf32>
    %51 = arith.maximumf %49, %50 : vector<4x32xf32>
    %c56 = arith.constant 56 : index
    %c0_27 = arith.constant 0 : index
    %52 = vector.load %arg5[%c56, %c0_27] : memref<112x32xf32, #tpu.memory_space<vmem>>, vector<32x16xf32>
    %c88 = arith.constant 88 : index
    %c0_28 = arith.constant 0 : index
    %53 = vector.load %arg5[%c88, %c0_28] : memref<112x32xf32, #tpu.memory_space<vmem>>, vector<1x16xf32>
    %cst_29 = arith.constant dense<0.000000e+00> : vector<4x16xf32>
    %54 = tpu.matmul %51, %52, %cst_29 {dimension_numbers = #tpu.dot_dimension_numbers<[1], [0], [0], [1], [0, 0, 1, 1], [], []>} : vector<4x32xf32>, vector<32x16xf32>, vector<4x16xf32> -> vector<4x16xf32>
    %55 = vector.broadcast %53 : vector<1x16xf32> to vector<4x16xf32>
    %56 = arith.addf %54, %55 : vector<4x16xf32>
    %cst_30 = arith.constant 0.000000e+00 : f32
    %57 = vector.broadcast %cst_30 : f32 to vector<4x16xf32>
    %58 = arith.maximumf %56, %57 : vector<4x16xf32>
    %c96 = arith.constant 96 : index
    %c0_31 = arith.constant 0 : index
    %59 = vector.load %arg5[%c96, %c0_31] : memref<112x32xf32, #tpu.memory_space<vmem>>, vector<1x16xf32>
    %c104 = arith.constant 104 : index
    %c0_32 = arith.constant 0 : index
    %60 = vector.load %arg5[%c104, %c0_32] : memref<112x32xf32, #tpu.memory_space<vmem>>, vector<1x1xf32>
    %cst_33 = arith.constant dense<0.000000e+00> : vector<1x4xf32>
    %61 = tpu.matmul %59, %58, %cst_33 {dimension_numbers = #tpu.dot_dimension_numbers<[1], [1], [0], [0], [0, 0, 1, 0], [], []>} : vector<1x16xf32>, vector<4x16xf32>, vector<1x4xf32> -> vector<1x4xf32>
    %62 = vector.broadcast %60 : vector<1x1xf32> to vector<1x4xf32>
    %63 = arith.addf %61, %62 : vector<1x4xf32>
    %c0_34 = arith.constant 0 : index
    %c0_35 = arith.constant 0 : index
    %64 = vector.load %arg6[%c0_34, %c0_35] : memref<1x4xf32, #tpu.memory_space<vmem>>, vector<1x4xf32>
    tpu.vector_store %arg6[%c0_34, %c0_35], %63 {strides = array<i32>} : memref<1x4xf32, #tpu.memory_space<vmem>>, vector<1x4xf32>,
    return
  }
  func.func @transform_0(%arg0: i32) -> (i32, i32, i32) {
    %c0_i32 = arith.constant 0 : i32
    %c0_i32_0 = arith.constant 0 : i32
    %c0_i32_1 = arith.constant 0 : i32
    %c0_i32_2 = arith.constant 0 : i32
    return %c0_i32, %c0_i32_0, %c0_i32_1 : i32, i32, i32
  }
  func.func @transform_1(%arg0: i32) -> (i32, i32, i32) {
    %c0_i32 = arith.constant 0 : i32
    %c0_i32_0 = arith.constant 0 : i32
    %c0_i32_1 = arith.constant 0 : i32
    %c0_i32_2 = arith.constant 0 : i32
    return %c0_i32, %c0_i32_0, %c0_i32_1 : i32, i32, i32
  }
  func.func @transform_2(%arg0: i32) -> (i32, i32, i32) {
    %c0_i32 = arith.constant 0 : i32
    %c0_i32_0 = arith.constant 0 : i32
    %c0_i32_1 = arith.constant 0 : i32
    %c0_i32_2 = arith.constant 0 : i32
    return %c0_i32, %c0_i32_0, %c0_i32_1 : i32, i32, i32
  }
  func.func @transform_3(%arg0: i32) -> (i32, i32, i32) {
    %c0_i32 = arith.constant 0 : i32
    %c0_i32_0 = arith.constant 0 : i32
    %c0_i32_1 = arith.constant 0 : i32
    %c0_i32_2 = arith.constant 0 : i32
    return %c0_i32, %c0_i32_0, %c0_i32_1 : i32, i32, i32
  }
  func.func @transform_4(%arg0: i32) -> (i32, i32) {
    %c0_i32 = arith.constant 0 : i32
    %c0_i32_0 = arith.constant 0 : i32
    %c0_i32_1 = arith.constant 0 : i32
    return %c0_i32, %c0_i32_0 : i32, i32
  }
  func.func @transform_5(%arg0: i32) -> (i32, i32) {
    %c0_i32 = arith.constant 0 : i32
    %c0_i32_0 = arith.constant 0 : i32
    %c0_i32_1 = arith.constant 0 : i32
    return %c0_i32, %c0_i32_0 : i32, i32
  }
}

</mosaic_0001>

<bundles_post_ra>
// kernel: forward.1
= control target key start
LH: loop header
LB: loop body
LE: loop exit
PB: predicated region body
PF: predicated region fallthrough
CT: control target
= control target key end

     0   :  { %vm66_vm0 = vcmask 64512   ;;  %vm832_vm1 = vmmov 0   ;;  %vm402_vm2 = vcmask 130112   ;;  %vm409_vm3 = vcmask 195712   ;;  %s1311_s0 = inlined_call_operand.vmem [shape: f32[2,32,8], index: 0, kind: input, shape index: {}]   ;;  %s1312_s4 = inlined_call_operand.vmem [shape: f32[112,32], index: 4, kind: input, shape index: {}]   ;;  %s1313_s1 = inlined_call_operand.vmem [shape: f32[2,32,8], index: 1, kind: input, shape index: {}]   ;;  %s1314_s2 = inlined_call_operand.vmem [shape: f32[2,32,8], index: 2, kind: input, shape index: {}]   ;;  %s1315_s3 = inlined_call_operand.vmem [shape: f32[2,32,8], index: 3, kind: input, shape index: {}]   ;;  %s1316_s5 = inlined_call_operand.vmem [shape: f32[1,4], index: 5, kind: output, shape index: {}]  }
   0x1   :  { %v867_v0 = vld [vmem:[%s1312_s4] ss:$0 sm:$0xff]  ;;  %v27_v5 = vld [vmem:[%s1311_s0 + $0x28] sm:$0xff]  ;;  %v28_v60 = vld [vmem:[%s1311_s0 + $0x30] sm:$0xff]  ;;  %vm416_vm4 = vcmask 261312   ;;  %vm437_vm5 = vcmask 1041409  }
   0x2   :  { %v26_v1 = vld [vmem:[%s1311_s0 + $0x20] sm:$0xff]  ;;  %v23_v6 = vld [vmem:[%s1311_s0 + $0x8] sm:$0xff]  ;;  %v891_v8 = vmul.f32 %v867_v0, %v27_v5  ;;  %v24_v61 = vld [vmem:[%s1311_s0 + $0x10] sm:$0xff]  ;;  %vm486_vm6 = vcmask 1043459   ;;  %vm489_vm7 = vcmask 1041408   ;;  %vm500_vm8 = vcmask 261120  }
   0x3   :  { %v22_v2 = vld [vmem:[%s1311_s0] sm:$0xff]  ;;  %v876_v3 = vmul.f32 %v867_v0, %v26_v1  ;;  %v43_v7 = vld [vmem:[%s1313_s1 + $0x8] sm:$0xff]  ;;  %v894_v9 = vmul.f32 %v867_v0, %v23_v6  ;;  %vm665_vm9 = vcmask 130048   ;;  %vm742_vm10 = vcmask 24576  }
   0x4   :  { %v879_v4 = vmul.f32 %v867_v0, %v22_v2  ;;  %v42_v10 = vld [vmem:[%s1313_s1] sm:$0xff]  ;;  %v904_v13 = vmul.f32 %v867_v0, %v43_v7  ;;  %v47_v15 = vld [vmem:[%s1313_s1 + $0x28] sm:$0xff]  ;;  %v96_v17 = vmul.f32 %v891_v8, %v891_v8 }
   0x5   :  { %v95_v11 = vmul.f32 %v876_v3, %v876_v3  ;;  %v50_v14 = vmul.f32 %v867_v0, %v42_v10  ;;  %v46_v16 = vld [vmem:[%s1313_s1 + $0x20] sm:$0xff]  ;;  %v92_v18 = vmul.f32 %v894_v9, %v894_v9  ;;  %v55_v21 = vmul.f32 %v867_v0, %v47_v15  ;;  %v928_v27 = vld [vmem:[%s1312_s4 + $0x8] ss:$0 sm:$0xff] }
   0x6   :  { %v91_v12 = vmul.f32 %v879_v4, %v879_v4  ;;  %v54_v22 = vmul.f32 %v867_v0, %v46_v16  ;;  %v114_v23 = vsel %vm66_vm0, %v96_v17, 0.0  ;;  %v124_v25 = vmul.f32 %v904_v13, %v904_v13  ;;  %v196_v28 = vld [vmem:[%s1314_s2 + $0x8] sm:$0xff]  ;;  %v195_v29 = vld [vmem:[%s1314_s2] sm:$0xff] }
   0x7   :  { %v111_v19 = vsel %vm66_vm0, %v95_v11, 0.0  ;;  %v102_v24 = vsel %vm66_vm0, %v92_v18, 0.0  ;;  %v123_v26 = vmul.f32 %v50_v14, %v50_v14  ;;  %v128_v30 = vmul.f32 %v55_v21, %v55_v21  ;;  %v200_v36 = vld [vmem:[%s1314_s2 + $0x28] sm:$0xff]  ;;  %v199_v37 = vld [vmem:[%s1314_s2 + $0x20] sm:$0xff] }
   0x8   :  { %v99_v20 = vsel %vm66_vm0, %v91_v12, 0.0  ;;  %112 = vadd.xlane.f32.xlu1 %v111_v19  ;;  %v127_v31 = vmul.f32 %v54_v22, %v54_v22  ;;  %v134_v32 = vsel %vm66_vm0, %v124_v25, 0.0  ;;  %v939_v34 = vmul.f32 %v928_v27, %v196_v28  ;;  %v216_v44 = vld [vmem:[%s1315_s3 + $0x8] sm:$0xff]  ;;  %v215_v45 = vld [vmem:[%s1315_s3] sm:$0xff] }
   0x9   :  { %100 = vadd.xlane.f32.xlu0 %v99_v20  ;;  %v131_v33 = vsel %vm66_vm0, %v123_v26, 0.0  ;;  %v942_v35 = vmul.f32 %v928_v27, %v195_v29  ;;  %v146_v38 = vsel %vm66_vm0, %v128_v30, 0.0  ;;  %v957_v42 = vmul.f32 %v928_v27, %v200_v36  ;;  %v220_v48 = vld [vmem:[%s1315_s3 + $0x28] sm:$0xff]  ;;  %v219_v53 = vld [vmem:[%s1315_s3 + $0x20] sm:$0xff]  ;;  %v221_v30 = vld [vmem:[%s1315_s3 + $0x30] sm:$0xff] }
   0xa   :  { %v143_v39 = vsel %vm66_vm0, %v127_v31, 0.0  ;;  %v264_v40 = vmul.f32 %v939_v34, %v939_v34  ;;  %v960_v43 = vmul.f32 %v928_v27, %v199_v37  ;;  %v969_v46 = vmul.f32 %v928_v27, %v216_v44  ;;  %v217_v31 = vld [vmem:[%s1315_s3 + $0x10] sm:$0xff] }
   0xb   :  { %v263_v41 = vmul.f32 %v942_v35, %v942_v35  ;;  %v972_v47 = vmul.f32 %v928_v27, %v215_v45  ;;  %v268_v51 = vmul.f32 %v957_v42, %v957_v42  ;;  %v987_v54 = vmul.f32 %v928_v27, %v220_v48 }
   0xc   :  { %115 = vadd.xlane.f32.xlu1 %v114_v23  ;;  %v274_v49 = vsel %vm66_vm0, %v264_v40, 0.0  ;;  %v267_v52 = vmul.f32 %v960_v43, %v960_v43  ;;  %v296_v55 = vmul.f32 %v969_v46, %v969_v46  ;;  %v996_v59 = vmul.f32 %v928_v27, %v219_v53  ;;  %v29_v40 = vld [vmem:[%s1311_s0 + $0x38] sm:$0xff] }
   0xd   :  { %103 = vadd.xlane.f32.xlu0 %v102_v24  ;;  %v271_v50 = vsel %vm66_vm0, %v263_v41, 0.0  ;;  %v295_v56 = vmul.f32 %v972_v47, %v972_v47  ;;  %v286_v57 = vsel %vm66_vm0, %v268_v51, 0.0  ;;  %v300_v62 = vmul.f32 %v987_v54, %v987_v54  ;;  %v25_v41 = vld [vmem:[%s1311_s0 + $0x18] sm:$0xff] }
   0xe   :  { %v283_v58 = vsel %vm66_vm0, %v267_v52, 0.0  ;;  %v58_v63 = vmul.f32 %v50_v14, %v879_v4  ;;  %v306_v1 = vsel %vm66_vm0, %v296_v55, 0.0  ;;  %v63_v5 = vmul.f32 %v55_v21, %v891_v8  ;;  %v48_v4 = vld [vmem:[%s1313_s1 + $0x30] sm:$0xff]  ;;  %v49_v52 = vld [vmem:[%s1313_s1 + $0x38] sm:$0xff] }
   0xf   :  { %v303_v2 = vsel %vm66_vm0, %v295_v56, 0.0  ;;  %v62_v6 = vmul.f32 %v54_v22, %v876_v3  ;;  %v299_v7 = vmul.f32 %v996_v59, %v996_v59  ;;  %v1014_v10 = vmul.f32 %v867_v0, %v28_v60  ;;  %v44_v3 = vld [vmem:[%s1313_s1 + $0x10] sm:$0xff]  ;;  %v45_v53 = vld [vmem:[%s1313_s1 + $0x18] sm:$0xff] }
  0x10   :  { %135 = vadd.xlane.f32.xlu1 %v134_v32  ;;  %v1017_v11 = vmul.f32 %v867_v0, %v24_v61  ;;  %v1023_v12 = vsel %vm66_vm0, %v58_v63, 0.0  ;;  %v1029_v8 = vsel %vm66_vm0, %v63_v5, 0.0  ;;  %v318_v15 = vsel %vm66_vm0, %v300_v62, 0.0  ;;  %v201_v21 = vld [vmem:[%s1314_s2 + $0x30] sm:$0xff]  ;;  %v202_v62 = vld [vmem:[%s1314_s2 + $0x38] sm:$0xff] }
  0x11   :  { %132 = vadd.xlane.f32.xlu0 %v131_v33  ;;  %v1032_v14 = vsel %vm66_vm0, %v62_v6, 0.0  ;;  %v1036_v16 = vmul.f32 %v867_v0, %v48_v4  ;;  %v315_v17 = vsel %vm66_vm0, %v299_v7, 0.0  ;;  %v97_v18 = vmul.f32 %v1014_v10, %v1014_v10  ;;  %v197_v22 = vld [vmem:[%s1314_s2 + $0x10] sm:$0xff]  ;;  %v198_v63 = vld [vmem:[%s1314_s2 + $0x18] sm:$0xff] }
  0x12   :  { %v93_v19 = vmul.f32 %v1017_v11, %v1017_v11  ;;  %v1044_v20 = vmul.f32 %v867_v0, %v44_v3  ;;  %v1053_v23 = vmul.f32 %v928_v27, %v201_v21  ;;  %v1056_v24 = vmul.f32 %v928_v27, %v197_v22  ;;  %v222_v4 = vld [vmem:[%s1315_s3 + $0x38] sm:$0xff] }
  0x13   :  { %v117_v25 = vsel %vm66_vm0, %v97_v18, 0.0  ;;  %v129_v28 = vmul.f32 %v1036_v16, %v1036_v16  ;;  %v1073_v33 = vmul.f32 %v928_v27, %v221_v30  ;;  %v1098_v51 = vmul.f32 %v867_v0, %v25_v41  ;;  %v218_v3 = vld [vmem:[%s1315_s3 + $0x18] sm:$0xff]  ;;  %v494_v41 = vld [vmem:[%s1312_s4 + $0x28] sm:$0xff] }
  0x14   :  { %147 = vadd.xlane.f32.xlu1 %v146_v38  ;;  %v105_v26 = vsel %vm66_vm0, %v93_v19, 0.0  ;;  %v125_v29 = vmul.f32 %v1044_v20, %v1044_v20  ;;  %v269_v32 = vmul.f32 %v1053_v23, %v1053_v23  ;;  %v265_v38 = vmul.f32 %v1056_v24, %v1056_v24 }
  0x15   :  { %144 = vadd.xlane.f32.xlu0 %v143_v39  ;;  %v149_v36 = vsel %vm66_vm0, %v129_v28, 0.0  ;;  %v1080_v39 = vmul.f32 %v928_v27, %v217_v31  ;;  %v301_v45 = vmul.f32 %v1073_v33, %v1073_v33  ;;  %v1108_v56 = vmul.f32 %v867_v0, %v49_v52 }
  0x16   :  { %v137_v37 = vsel %vm66_vm0, %v125_v29, 0.0  ;;  %v289_v44 = vsel %vm66_vm0, %v269_v32, 0.0  ;;  %v277_v48 = vsel %vm66_vm0, %v265_v38, 0.0  ;;  %v94_v60 = vmul.f32 %v1098_v51, %v1098_v51 }
  0x17   :  { %v321_v55 = vsel %vm66_vm0, %v301_v45, 0.0  ;;  %v53_v61 = vmul.f32 %v867_v0, %v45_v53  ;;  %v226_v22 = vmul.f32 %v928_v27, %v218_v3  ;;  %v59_v32 = vmul.f32 %v904_v13, %v894_v9  ;;  %v492_v45 = vld [vmem:[%s1312_s4 + $0x18] sm:$0xff] }
  0x18   :  { %275 = vadd.xlane.f32.xlu1 %v274_v49  ;;  %v297_v49 = vmul.f32 %v1080_v39, %v1080_v39  ;;  %v108_v6 = vsel %vm66_vm0, %v94_v60, 0.0  ;;  %v236_v13 = vmul.f32 %v987_v54, %v957_v42  ;;  %v233_v54 = vmul.f32 %v1080_v39, %v1056_v24 }
  0x19   :  { %272 = vadd.xlane.f32.xlu0 %v271_v50  ;;  %v1095_v50 = vmul.f32 %v867_v0, %v29_v40  ;;  %v130_v0 = vmul.f32 %v1108_v56, %v1108_v56  ;;  %v126_v7 = vmul.f32 %v53_v61, %v53_v61  ;;  %v298_v29 = vmul.f32 %v226_v22, %v226_v22 }
  0x1a   :  { %v831_v40 = vmov 0.0  }
  0x1b   :  { %v152_v18 = vsel %vm66_vm0, %v130_v0, 0.0  ;;  %v140_v19 = vsel %vm66_vm0, %v126_v7, 0.0  ;;  %v312_v31 = vsel %vm66_vm0, %v298_v29, 0.0  ;;  %768 = vmatprep.subr.mxu0 %v831_v40  ;;  %779 = vmatprep.subr.mxu1 %v831_v40 }
  0x1c   :  { %287 = vadd.xlane.f32.xlu1 %v286_v57  ;;  %v309_v57 = vsel %vm66_vm0, %v297_v49, 0.0  ;;  %769 = vmatpush3.msra.mxu0 %v494_v41  ;;  %v578_v49 = vld [vmem:[%s1312_s4 + $0x50] sm:$0xff] }
  0x1d   :  { %284 = vadd.xlane.f32.xlu0 %v283_v58  ;;  %v98_v58 = vmul.f32 %v1095_v50, %v1095_v50  ;;  %770 = vmatprep.subr.mxu0 %v831_v40 }
  0x1e   :  { %776 = vmatprep.mubr.msk.f32.mxu0 %vm832_vm1, %v831_v40  ;;  %787 = vmatprep.mubr.msk.f32.mxu1 %vm832_vm1, %v831_v40 }
  0x1f   :  { %v120_v5 = vsel %vm66_vm0, %v98_v58, 0.0  ;;  %780 = vmatpush3.msra.mxu1 %v578_v49 }
  0x20   :  { %307 = vadd.xlane.f32.xlu1 %v306_v1  ;;  %v214_v1 = vmul.f32 %v928_v27, %v202_v62  ;;  %781 = vmatprep.subr.mxu1 %v831_v40 }
  0x21   :  { %304 = vadd.xlane.f32.xlu0 %v303_v2  ;;  %v210_v2 = vmul.f32 %v928_v27, %v198_v63 }
  0x23   :  { %v266_v21 = vmul.f32 %v210_v2, %v210_v2 }
  0x24   :  { %319 = vadd.xlane.f32.xlu1 %v318_v15  ;;  %v270_v15 = vmul.f32 %v214_v1, %v214_v1 }
  0x25   :  { %316 = vadd.xlane.f32.xlu0 %v315_v17  ;;  %v230_v17 = vmul.f32 %v928_v27, %v222_v4  ;;  %v70_v27 = vsel %vm66_vm0, %v59_v32, 0.0 }
  0x27   :  { %v302_v28 = vmul.f32 %v230_v17, %v230_v17 }
  0x28   :  { %118 = vadd.xlane.f32.xlu1 %v117_v25  ;;  %v292_v25 = vsel %vm66_vm0, %v270_v15, 0.0 }
  0x29   :  { %106 = vadd.xlane.f32.xlu0 %v105_v26  ;;  %v280_v26 = vsel %vm66_vm0, %v266_v21, 0.0  ;;  %v324_v30 = vsel %vm66_vm0, %v302_v28, 0.0 }
  0x2c   :  { %150 = vadd.xlane.f32.xlu1 %v149_v36  ;;  %v232_v36 = vmul.f32 %v969_v46, %v939_v34  ;;  %v254_v34 = vsel %vm66_vm0, %v236_v13, 0.0  ;;  %v64_v46 = vmul.f32 %v1036_v16, %v1014_v10  ;;  %v245_v10 = vsel %vm66_vm0, %v233_v54, 0.0 }
  0x2d   :  { %138 = vadd.xlane.f32.xlu0 %v137_v37  ;;  %v231_v37 = vmul.f32 %v972_v47, %v942_v35  ;;  %v60_v47 = vmul.f32 %v1044_v20, %v1017_v11  ;;  %v65_v11 = vmul.f32 %v1108_v56, %v1095_v50 }
  0x2e   :  { %v242_v38 = vsel %vm66_vm0, %v232_v36, 0.0 }
  0x2f   :  { %v239_v9 = vsel %vm66_vm0, %v231_v37, 0.0  ;;  %v73_v42 = vsel %vm66_vm0, %v60_v47, 0.0  ;;  %v88_v16 = vsel %vm66_vm0, %v65_v11, 0.0 }
  0x30   :  { %290 = vadd.xlane.f32.xlu1 %v289_v44  ;;  %v493_v44 = vld [vmem:[%s1312_s4 + $0x20] sm:$0xff] }
  0x31   :  { %278 = vadd.xlane.f32.xlu0 %v277_v48  ;;  %771 = vmatpush3.msra.mxu0 %v493_v44  ;;  %v491_v48 = vld [vmem:[%s1312_s4 + $0x10] sm:$0xff] }
  0x32   :  { %772 = vmatprep.subr.mxu0 %v831_v40 }
  0x33   :  { %773 = vmatpush3.msra.mxu0 %v492_v45 }
  0x34   :  { %322 = vadd.xlane.f32.xlu1 %v321_v55  ;;  %774 = vmatprep.subr.mxu0 %v831_v40 }
  0x35   :  { %310 = vadd.xlane.f32.xlu0 %v309_v57  ;;  %775 = vmatpush3.msra.mxu0 %v491_v48 }
  0x36   :  { %790 = vmatprep.subr.mxu0 %v831_v40 }
  0x38   :  { %121 = vadd.xlane.f32.xlu1 %v120_v5 }
  0x39   :  { %109 = vadd.xlane.f32.xlu0 %v108_v6 }
  0x3c   :  { %153 = vadd.xlane.f32.xlu1 %v152_v18 }
  0x3d   :  { %141 = vadd.xlane.f32.xlu0 %v140_v19 }
  0x40   :  { %293 = vadd.xlane.f32.xlu1 %v292_v25 }
  0x41   :  { %281 = vadd.xlane.f32.xlu0 %v280_v26 }
  0x44   :  { %325 = vadd.xlane.f32.xlu1 %v324_v30 }
  0x45   :  { %313 = vadd.xlane.f32.xlu0 %v312_v31 }
  0x48   :  { %71 = vadd.xlane.f32.xlu1 %v70_v27 }
  0x49   :  { %68 = vadd.xlane.f32.xlu0 %v1023_v12  ;;  %v235_v12 = vmul.f32 %v996_v59, %v960_v43  ;;  %v237_v43 = vmul.f32 %v1073_v33, %v1053_v23  ;;  %v238_v23 = vmul.f32 %v230_v17, %v214_v1  ;;  %v234_v33 = vmul.f32 %v226_v22, %v210_v2 }
  0x4b   :  { %v251_v35 = vsel %vm66_vm0, %v235_v12, 0.0  ;;  %v257_v59 = vsel %vm66_vm0, %v237_v43, 0.0  ;;  %v260_v24 = vsel %vm66_vm0, %v238_v23, 0.0  ;;  %v248_v39 = vsel %vm66_vm0, %v234_v33, 0.0 }
  0x4c   :  { %83 = vadd.xlane.f32.xlu1 %v1029_v8  ;;  %v85_v8 = vsel %vm66_vm0, %v64_v46, 0.0 }
  0x4d   :  { %80 = vadd.xlane.f32.xlu0 %v1032_v14  ;;  %v61_v14 = vmul.f32 %v53_v61, %v1098_v51 }
  0x4f   :  { %v76_v20 = vsel %vm66_vm0, %v61_v14, 0.0 }
  0x50   :  { %243 = vadd.xlane.f32.xlu1 %v242_v38 }
  0x51   :  { %240 = vadd.xlane.f32.xlu0 %v239_v9 }
  0x54   :  { %255 = vadd.xlane.f32.xlu1 %v254_v34 }
  0x55   :  { %252 = vadd.xlane.f32.xlu0 %v251_v35 }
  0x58   :  { %86 = vadd.xlane.f32.xlu1 %v85_v8 }
  0x59   :  { %74 = vadd.xlane.f32.xlu0 %v73_v42 }
  0x5c   :  { %258 = vadd.xlane.f32.xlu1 %v257_v59 }
  0x5d   :  { %246 = vadd.xlane.f32.xlu0 %v245_v10 }
  0x60   :  { %89 = vadd.xlane.f32.xlu1 %v88_v16 }
  0x61   :  { %77 = vadd.xlane.f32.xlu0 %v76_v20 }
  0x64   :  { %261 = vadd.xlane.f32.xlu1 %v260_v24  ;;  %v391_v24 = vlaneseq }
  0x65   :  { %249 = vadd.xlane.f32.xlu0 %v248_v39 }
  0x91   :  { %v113_v50 = vpop.xlane.xlu1 %112 }
  0x92   :  { %v101_v51 = vpop.xlane.xlu0 %100  ;;  %v159_v8 = vmax.f32 %v113_v50, 1e-16 }
  0x93   :  { %v155_v55 = vmax.f32 %v101_v51, 1e-16  ;;  %v1223_v51 = vand.u32 127, %v391_v24 }
  0x95   :  { %v116_v52 = vpop.xlane.xlu1 %115 }
  0x96   :  { %v104_v53 = vpop.xlane.xlu0 %103  ;;  %v160_v35 = vmax.f32 %v116_v52, 1e-16 }
  0x97   :  { %v156_v58 = vmax.f32 %v104_v53, 1e-16 }
  0x99   :  { %v136_v56 = vpop.xlane.xlu1 %135 }
  0x9a   :  { %v133_v57 = vpop.xlane.xlu0 %132  ;;  %v164_v60 = vmax.f32 %v136_v56, 1e-16 }
  0x9b   :  { %v163_v61 = vmax.f32 %v133_v57, 1e-16 }
  0x9c   :  { %v172_v62 = vmul.f32 %v164_v60, %v156_v58 }
  0x9d   :  { %v171_v63 = vmul.f32 %v163_v61, %v155_v55  ;;  %v148_v1 = vpop.xlane.xlu1 %147 }
  0x9e   :  { %v145_v2 = vpop.xlane.xlu0 %144  ;;  %v168_v9 = vmax.f32 %v148_v1, 1e-16  ;;  %799 = vrsqrt.f32 %v172_v62 }
  0x9f   :  { %v167_v12 = vmax.f32 %v145_v2, 1e-16  ;;  %801 = vrsqrt.f32 %v171_v63 }
  0xa0   :  { %v176_v59 = vmul.f32 %v168_v9, %v160_v35 }
  0xa1   :  { %v276_v5 = vpop.xlane.xlu1 %275  ;;  %v175_v11 = vmul.f32 %v167_v12, %v159_v8 }
  0xa2   :  { %v273_v6 = vpop.xlane.xlu0 %272  ;;  %v328_v36 = vmax.f32 %v276_v5, 1e-16  ;;  %v1233_v5 = vshrl.u32 %v391_v24, 7 }
  0xa3   :  { %v327_v13 = vmax.f32 %v273_v6, 1e-16  ;;  %v397_v6 = vadd.s32 4294967288, %v1223_v51 }
  0xa5   :  { %v288_v0 = vpop.xlane.xlu1 %287 }
  0xa6   :  { %v285_v7 = vpop.xlane.xlu0 %284  ;;  %v332_v10 = vmax.f32 %v288_v0, 1e-16 }
  0xa7   :  { %v331_v14 = vmax.f32 %v285_v7, 1e-16 }
  0xa9   :  { %v308_v4 = vpop.xlane.xlu1 %307 }
  0xaa   :  { %v305_v3 = vpop.xlane.xlu0 %304  ;;  %v336_v32 = vmax.f32 %v308_v4, 1e-16 }
  0xab   :  { %v335_v27 = vmax.f32 %v305_v3, 1e-16  ;;  %v800_v1 = vpop.eup %799 }
  0xac   :  { %v344_v34 = vmul.f32 %v336_v32, %v328_v36  ;;  %v802_v0 = vpop.eup %801 }
  0xad   :  { %v320_v15 = vpop.xlane.xlu1 %319  ;;  %v343_v46 = vmul.f32 %v335_v27, %v327_v13 }
  0xae   :  { %v317_v17 = vpop.xlane.xlu0 %316  ;;  %v340_v47 = vmax.f32 %v320_v15, 1e-16  ;;  %803 = vrsqrt.f32 %v344_v34 }
  0xaf   :  { %v339_v42 = vmax.f32 %v317_v17, 1e-16  ;;  %805 = vrsqrt.f32 %v343_v46 }
  0xb0   :  { %v348_v16 = vmul.f32 %v340_v47, %v332_v10  ;;  %807 = vrsqrt.f32 %v176_v59 }
  0xb1   :  { %v119_v18 = vpop.xlane.xlu1 %118  ;;  %v347_v20 = vmul.f32 %v339_v42, %v331_v14  ;;  %809 = vrsqrt.f32 %v175_v11 }
  0xb2   :  { %v1205_v19 = vpop.xlane.xlu0 %106  ;;  %811 = vrsqrt.f32 %v348_v16  ;;  %v161_v44 = vmax.f32 %v119_v18, 1e-16 }
  0xb3   :  { %813 = vrsqrt.f32 %v347_v20  ;;  %v157_v58 = vmax.f32 %v1205_v19, 1e-16 }
  0xb5   :  { %v151_v21 = vpop.xlane.xlu1 %150 }
  0xb6   :  { %v1207_v22 = vpop.xlane.xlu0 %138  ;;  %v169_v39 = vmax.f32 %v151_v21, 1e-16 }
  0xb7   :  { %v165_v53 = vmax.f32 %v1207_v22, 1e-16 }
  0xb8   :  { %v177_v52 = vmul.f32 %v169_v39, %v161_v44  ;;  %v404_v44 = vadd.s32 4294967280, %v1223_v51 }
  0xb9   :  { %v291_v25 = vpop.xlane.xlu1 %290  ;;  %v173_v7 = vmul.f32 %v165_v53, %v157_v58 }
  0xba   :  { %v279_v26 = vpop.xlane.xlu0 %278  ;;  %v333_v50 = vmax.f32 %v291_v25, 1e-16  ;;  %815 = vrsqrt.f32 %v177_v52 }
  0xbb   :  { %v329_v55 = vmax.f32 %v279_v26, 1e-16  ;;  %v804_v15 = vpop.eup %803 }
  0xbc   :  { %v806_v19 = vpop.eup %805 }
  0xbd   :  { %v323_v28 = vpop.xlane.xlu1 %322  ;;  %v808_v27 = vpop.eup %807 }
  0xbe   :  { %v311_v29 = vpop.xlane.xlu0 %310  ;;  %v341_v41 = vmax.f32 %v323_v28, 1e-16  ;;  %v810_v9 = vpop.eup %809 }
  0xbf   :  { %v337_v45 = vmax.f32 %v311_v29, 1e-16  ;;  %v812_v35 = vpop.eup %811 }
  0xc0   :  { %v349_v56 = vmul.f32 %v341_v41, %v333_v50  ;;  %v814_v8 = vpop.eup %813 }
  0xc1   :  { %v1209_v30 = vpop.xlane.xlu1 %121  ;;  %v345_v60 = vmul.f32 %v337_v45, %v329_v55 }
  0xc2   :  { %v1211_v31 = vpop.xlane.xlu0 %109  ;;  %v162_v2 = vmax.f32 %v1209_v30, 1e-16  ;;  %817 = vrsqrt.f32 %v349_v56 }
  0xc3   :  { %v158_v4 = vmax.f32 %v1211_v31, 1e-16  ;;  %819 = vrsqrt.f32 %v345_v60 }
  0xc4   :  { %821 = vrsqrt.f32 %v173_v7 }
  0xc5   :  { %v154_v37 = vpop.xlane.xlu1 %153 }
  0xc6   :  { %v1213_v38 = vpop.xlane.xlu0 %141  ;;  %v170_v57 = vmax.f32 %v154_v37, 1e-16  ;;  %v1242_v37 = vsub.s32 %v397_v6, %v1233_v5  ;;  %v407_v6 = vsub.s32 %v404_v44, %v1233_v5 }
  0xc7   :  { %v166_v61 = vmax.f32 %v1213_v38, 1e-16  ;;  %v1246_v38 = vsub.s32 %v1223_v51, %v1233_v5  ;;  %v816_v41 = vpop.eup %815 }
  0xc8   :  { %v178_v17 = vmul.f32 %v170_v57, %v162_v2 }
  0xc9   :  { %v1215_v43 = vpop.xlane.xlu1 %293  ;;  %v174_v21 = vmul.f32 %v166_v61, %v158_v4 }
  0xca   :  { %v1217_v54 = vpop.xlane.xlu0 %281  ;;  %v334_v22 = vmax.f32 %v1215_v43, 1e-16  ;;  %823 = vrsqrt.f32 %v178_v17 }
  0xcb   :  { %v330_v25 = vmax.f32 %v1217_v54, 1e-16  ;;  %825 = vrsqrt.f32 %v174_v21 }
  0xcd   :  { %v326_v23 = vpop.xlane.xlu1 %325 }
  0xce   :  { %v314_v33 = vpop.xlane.xlu0 %313  ;;  %v342_v3 = vmax.f32 %v326_v23, 1e-16 }
  0xcf   :  { %v338_v18 = vmax.f32 %v314_v33, 1e-16  ;;  %v818_v45 = vpop.eup %817 }
  0xd0   :  { %v350_v36 = vmul.f32 %v342_v3, %v334_v22  ;;  %v820_v55 = vpop.eup %819 }
  0xd1   :  { %v1219_v48 = vpop.xlane.xlu1 %71  ;;  %v346_v13 = vmul.f32 %v338_v18, %v330_v25  ;;  %v822_v2 = vpop.eup %821 }
  0xd2   :  { %v1221_v49 = vpop.xlane.xlu0 %68  ;;  %v188_v29 = vmul.f32 %v800_v1, %v1219_v48  ;;  %827 = vrsqrt.f32 %v350_v36 }
  0xd3   :  { %v187_v30 = vmul.f32 %v802_v0, %v1221_v49  ;;  %829 = vrsqrt.f32 %v346_v13  ;;  %v411_v0 = vadd.s32 4294967272, %v1223_v51 }
  0xd5   :  { %v1228_v62 = vpop.xlane.xlu1 %83  ;;  %v414_v51 = vsub.s32 %v411_v0, %v1233_v5  ;;  %v658_v0 = vld [vmem:[%s1312_s4 + $0x60] sm:$0x1] }
  0xd6   :  { %v1230_v63 = vpop.xlane.xlu0 %80  ;;  %v192_v42 = vmul.f32 %v808_v27, %v1228_v62 }
  0xd7   :  { %v191_v10 = vmul.f32 %v810_v9, %v1230_v63  ;;  %v824_v7 = vpop.eup %823 }
  0xd9   :  { %v244_v26 = vpop.xlane.xlu1 %243 }
  0xda   :  { %v241_v28 = vpop.xlane.xlu0 %240  ;;  %v360_v32 = vmul.f32 %v804_v15, %v244_v26  ;;  %v376_v56 = vadd.f32 %v244_v26, %v1219_v48 }
  0xdb   :  { %v359_v31 = vmul.f32 %v806_v19, %v241_v28  ;;  %v375_v57 = vadd.f32 %v241_v28, %v1221_v49  ;;  %v826_v19 = vpop.eup %825 }
  0xdc   :  { %v368_v12 = vadd.f32 %v360_v32, %v188_v29  ;;  %v455_v49 = vrot.slane %v376_v56, %v1242_v37 }
  0xdd   :  { %v367_v34 = vadd.f32 %v359_v31, %v187_v30  ;;  %v256_v46 = vpop.xlane.xlu1 %255 }
  0xde   :  { %v253_v47 = vpop.xlane.xlu0 %252  ;;  %v401_v43 = vrot.slane %v368_v12, %v1242_v37  ;;  %v364_v59 = vmul.f32 %v812_v35, %v256_v46  ;;  %v380_v58 = vadd.f32 %v256_v46, %v1228_v62  ;;  %v451_v62 = vrot.slane %v375_v57, %v1246_v38 }
  0xdf   :  { %v396_v54 = vrot.slane %v367_v34, %v1246_v38  ;;  %v363_v11 = vmul.f32 %v814_v8, %v253_v47  ;;  %v379_v60 = vadd.f32 %v253_v47, %v1230_v63  ;;  %v828_v26 = vpop.eup %827 }
  0xe0   :  { %v372_v16 = vadd.f32 %v364_v59, %v192_v42  ;;  %v474_v63 = vrot.slane %v380_v58, %v1242_v37  ;;  %v830_v28 = vpop.eup %829  ;;  %v659_v58 = vld [vmem:[%s1312_s4 + $0x68] sm:$0x1] }
  0xe1   :  { %v1253_v14 = vsel %vm402_vm2, %v401_v43, %v396_v54  ;;  %v371_v20 = vadd.f32 %v363_v11, %v191_v10  ;;  %v87_v23 = vpop.xlane.xlu1 %86  ;;  %v470_v21 = vrot.slane %v379_v60, %v1246_v38  ;;  %v833_v60 = vmov 0  }
  0xe2   :  { %v75_v33 = vpop.xlane.xlu0 %74  ;;  %v425_v24 = vrot.slane %v372_v16, %v1242_v37  ;;  %v193_v4 = vmul.f32 %v816_v41, %v87_v23  ;;  %798 = vset.pattern.permute.xlu0 %v833_v60 }
  0xe3   :  { %v421_v39 = vrot.slane %v371_v20, %v1246_v38  ;;  %v189_v3 = vmul.f32 %v822_v2, %v75_v33  ;;  %v456_v38 = vsel %vm402_vm2, %v455_v49, %v451_v62  ;;  %v475_v34 = vsel %vm402_vm2, %v474_v63, %v470_v21  ;;  %662 = vperm.xlu0 %798, %v659_v58  }
  0xe5   :  { %v426_v50 = vsel %vm402_vm2, %v425_v24, %v421_v39  ;;  %v259_v52 = vpop.xlane.xlu1 %258 }
  0xe6   :  { %v247_v53 = vpop.xlane.xlu0 %246  ;;  %v365_v61 = vmul.f32 %v818_v45, %v259_v52  ;;  %v381_v15 = vadd.f32 %v259_v52, %v87_v23  ;;  %v576_v45 = vld [vmem:[%s1312_s4 + $0x40] sm:$0xff]  ;;  %v750_v52 = vld [vmem:[%s1312_s4 + $0x30] ss:$0 sm:$0xff] }
  0xe7   :  { %v361_v1 = vmul.f32 %v820_v55, %v247_v53  ;;  %v377_v17 = vadd.f32 %v247_v53, %v75_v33 }
  0xe8   :  { %v373_v22 = vadd.f32 %v365_v61, %v193_v4  ;;  %v479_v29 = vrot.slane %v381_v15, %v407_v6 }
  0xe9   :  { %v90_v18 = vpop.xlane.xlu1 %89  ;;  %v369_v25 = vadd.f32 %v361_v1, %v189_v3  ;;  %v460_v30 = vrot.slane %v377_v17, %v407_v6 }
  0xea   :  { %v78_v48 = vpop.xlane.xlu0 %77  ;;  %v194_v32 = vmul.f32 %v824_v7, %v90_v18  ;;  %v430_v35 = vrot.slane %v373_v22, %v407_v6  ;;  %v480_v43 = vsel %vm409_vm3, %v479_v29, %v475_v34 }
  0xeb   :  { %v190_v31 = vmul.f32 %v826_v19, %v78_v48  ;;  %v408_v46 = vrot.slane %v369_v25, %v407_v6  ;;  %v461_v54 = vsel %vm409_vm3, %v460_v30, %v456_v38 }
  0xec   :  { %v431_v23 = vsel %vm409_vm3, %v430_v35, %v426_v50  ;;  %v575_v50 = vld [vmem:[%s1312_s4 + $0x38] sm:$0xff] }
  0xed   :  { %v262_v27 = vpop.xlane.xlu1 %261  ;;  %v410_v20 = vsel %vm409_vm3, %v408_v46, %v1253_v14  ;;  %v577_v14 = vld [vmem:[%s1312_s4 + $0x48] sm:$0xff] }
  0xee   :  { %v250_v36 = vpop.xlane.xlu0 %249  ;;  %v366_v9 = vmul.f32 %v828_v26, %v262_v27  ;;  %v382_v13 = vadd.f32 %v262_v27, %v90_v18  ;;  %782 = vmatpush3.msra.mxu1 %v577_v14 }
  0xef   :  { %v362_v12 = vmul.f32 %v830_v28, %v250_v36  ;;  %v378_v37 = vadd.f32 %v250_v36, %v78_v48  ;;  %783 = vmatprep.subr.mxu1 %v831_v40 }
  0xf0   :  { %v374_v47 = vadd.f32 %v366_v9, %v194_v32  ;;  %v484_v5 = vrot.slane %v382_v13, %v414_v51  ;;  %784 = vmatpush3.msra.mxu1 %v576_v45 }
  0xf1   :  { %v370_v8 = vadd.f32 %v362_v12, %v190_v31  ;;  %v465_v42 = vrot.slane %v378_v37, %v414_v51  ;;  %785 = vmatprep.subr.mxu1 %v831_v40 }
  0xf2   :  { %v435_v59 = vrot.slane %v374_v47, %v414_v51  ;;  %v485_v10 = vsel %vm416_vm4, %v484_v5, %v480_v43  ;;  %786 = vmatpush3.msra.mxu1 %v575_v50 }
  0xf3   :  { %v415_v11 = vrot.slane %v370_v8, %v414_v51  ;;  %v466_v16 = vsel %vm416_vm4, %v465_v42, %v461_v54 }
  0xf4   :  { %v436_v24 = vsel %vm416_vm4, %v435_v59, %v431_v23  ;;  %v487_v41 = vsel %vm486_vm6, %v485_v10, %v466_v16 }
  0xf5   :  { %v417_v33 = vsel %vm416_vm4, %v415_v11, %v410_v20 }
  0xf6   :  { %v438_v39 = vsel %vm437_vm5, %v436_v24, %v417_v33 }
  0xf7   :  { %v490_v44 = vsel %vm489_vm7, %v438_v39, %v487_v41 }
  0xf8   :  { %777 = vmatmul.mubr.msk.f32.vlgmr.msra.gmra.mxu0 %vm500_vm8, %v490_v44 }
  0xf9   :  { %792 = vmatprep.mubr.msk.f32.mxu0 %vm832_vm1, %v831_v40  ;;  %v752_v40 = vld [vmem:[%s1312_s4 + $0x58] ss:$0 sm:$0xff] }
 0x15e   :  { %v663_v7 = vpop.permute.xlu0 %662 }
 0x1b8   :  { %v570_v53 = vpop.f32.mrf.mxu0 }
 0x1b9   :  { %v571_v55 = vadd.f32 %v750_v52, %v570_v53 }
 0x1ba   :  { %v778_v56 = vpop.f32.mrf.mxu0 }
 0x1bb   :  { %v574_v57 = vmax.f32 %v571_v55, 0.0 }
 0x1bd   :  { %788 = vmatmul.mubr.msk.f32.vlgmr.msra.gmra.mxu1 %vm500_vm8, %v574_v57 }
 0x27d   :  { %v653_v61 = vpop.f32.mrf.mxu1 }
 0x27e   :  { %v654_v1 = vadd.f32 %v752_v40, %v653_v61 }
 0x27f   :  { %v789_v2 = vpop.f32.mrf.mxu1 }
 0x280   :  { %v657_v6 = vmax.f32 %v654_v1, 0.0 }
 0x282   :  { %791 = vmatpush3.xpose.msk.msra.mxu0 %vm665_vm9, %v657_v6 }
 0x285   :  { %793 = vmatmul.mubr.msk.f32.vlgmr.msra.gmra.mxu0 %vm665_vm9, %v658_v0 }
 0x345   :  { %v738_v4 = vpop.f32.mrf.mxu0 }
 0x346   :  { %v739_v3 = vadd.f32 %v738_v4, %v663_v7 }
 0x347   :  { %v794_v15 = vpop.f32.mrf.mxu0 }
 0x348   :  { %743 = vst.msk [vmem:[%s1316_s5] sm:$0x1] %vm742_vm10, %v739_v3 }

</bundles_post_ra>
